<compile_context>
chip_gen: v5e
topology: v5e:2x2
jax: 0.10.0
libtpu: 0.0.40
codegen_flags: <defaults>
</compile_context>

<pallas_src>
import math
import numpy as np
import jax
import jax.numpy as jnp
from jax.experimental import pallas as pl
from jax.experimental.pallas import tpu as pltpu

HIDDEN = 32
NUM_HEADS = 4
HEAD_DIM = HIDDEN // NUM_HEADS
SEQ = 8
BATCH = 2


def mhsa_kernel(x_ref, w_ref, b_ref, mask_ref, ctx_ref, probs_ref):
    """Whole-batch fused QKV projection + batched multi-head attention."""
    B, S, H = x_ref.shape
    NH, HD = NUM_HEADS, HEAD_DIM
    QKV = 3 * HD  # combined q/k/v width per head (head-major weight layout)

    # ---- fused QKV projection: one (B*S, H) @ (H, 128) MXU push ----
    # (scale 1/sqrt(HD) is already folded into the Q columns of w/b)
    x2 = x_ref[...].reshape(B * S, H)                        # leading-dim merge (free)
    qkv = jnp.dot(x2, w_ref[...], preferred_element_type=jnp.float32) + b_ref[...]

    # ---- head split: one 24-lane slice per head + one stack ----
    # weight columns are head-major: [q_h | k_h | v_h] for h = 0..NH-1, then zero pad.
    per_head = [
        qkv[:, h * QKV:(h + 1) * QKV].reshape(B, S, QKV) for h in range(NH)
    ]
    a = jnp.stack(per_head, axis=1).reshape(B * NH, S, QKV)  # n = b*NH + h

    q = a[:, :, 0:HD]                                        # (B*NH, S, HD)
    k = a[:, :, HD:2 * HD]
    v = a[:, :, 2 * HD:3 * HD]

    # ---- batched attention over all (batch, head) pairs at once ----
    scores = jnp.einsum("nqd,nkd->nqk", q, k,
                        preferred_element_type=jnp.float32)  # (B*NH, S, S)

    # additive mask: (B,1,1,S) -> (B*NH,1,S); broadcasts over query rows in the add
    m = jnp.broadcast_to(mask_ref[...], (B, NH, 1, S)).reshape(B * NH, 1, S)
    scores = scores + m

    # numerically stable softmax along keys (exact division, see header note)
    mx = jnp.max(scores, axis=-1, keepdims=True)
    e = jnp.exp(scores - mx)
    probs = e / jnp.sum(e, axis=-1, keepdims=True)           # (B*NH, S, S)

    # TODO(synk): training-mode dropout on attention_probs omitted (eval semantics).

    ctx = jnp.einsum("nqk,nkd->nqd", probs, v,
                     preferred_element_type=jnp.float32)     # (B*NH, S, HD)

    # ---- stores ----
    probs_ref[...] = probs.reshape(B, NH, S, S).astype(probs_ref.dtype)

    c4 = ctx.reshape(B, NH, S, HD)                           # leading split (free)
    ctx_ref[...] = jnp.concatenate(
        [c4[:, h] for h in range(NH)], axis=-1).astype(ctx_ref.dtype)   # (B, S, H)


def fuse_qkv_params(wq, bq, wk, bk, wv, bv):
    """One-time parameter prep (outside the hot path): head-major fused QKV
    weight/bias with the 1/sqrt(HEAD_DIM) scale folded into the Q columns,
    zero-padded to a full 128-lane output dim."""
    scale = 1.0 / math.sqrt(HEAD_DIM)
    wq, bq = wq * scale, bq * scale
    w_cols, b_cols = [], []
    for h in range(NUM_HEADS):
        sl = slice(h * HEAD_DIM, (h + 1) * HEAD_DIM)
        w_cols += [wq[:, sl], wk[:, sl], wv[:, sl]]
        b_cols += [bq[:, sl], bk[:, sl], bv[:, sl]]
    w = jnp.concatenate(w_cols, axis=1)                      # (H, 3H), head-major
    b = jnp.concatenate(b_cols, axis=1)                      # (1, 3H)
    f_pad = ((3 * HIDDEN + 127) // 128) * 128                # -> 128 here
    w = jnp.pad(w, ((0, 0), (0, f_pad - 3 * HIDDEN)))
    b = jnp.pad(b, ((0, 0), (0, f_pad - 3 * HIDDEN)))
    return w, b


def multi_head_self_attention(x, w_qkv, b_qkv, mask):
    """x: [B,S,H]; w_qkv: [H,128] fused head-major (scale folded); b_qkv: [1,128];
    mask: [B,1,1,S] additive. Returns (context [B,S,H], probs [B,NH,S,S])."""
    B, S, H = x.shape
    vmem = pltpu.MemorySpace.VMEM
    return pl.pallas_call(
        mhsa_kernel,
        out_shape=(
            jax.ShapeDtypeStruct((B, S, H), x.dtype),
            jax.ShapeDtypeStruct((B, NUM_HEADS, S, S), x.dtype),
        ),
        in_specs=[
            pl.BlockSpec(memory_space=vmem),   # hidden_states
            pl.BlockSpec(memory_space=vmem),   # fused W_qkv (padded, scale folded)
            pl.BlockSpec(memory_space=vmem),   # fused b_qkv
            pl.BlockSpec(memory_space=vmem),   # compact additive mask
        ],
        out_specs=(
            pl.BlockSpec(memory_space=vmem),   # context_layer
            pl.BlockSpec(memory_space=vmem),   # attention_probs
        ),
    )(x, w_qkv, b_qkv, mask)


def reference(x, wq, bq, wk, bk, wv, bv, mask):
    """Pure-JAX reference mirroring the PyTorch forward (full-f32 matmuls)."""
    B, S, H = x.shape
    hp = jax.lax.Precision.HIGHEST
    q = jnp.dot(x, wq, precision=hp) + bq[0]
    k = jnp.dot(x, wk, precision=hp) + bk[0]
    v = jnp.dot(x, wv, precision=hp) + bv[0]

    def split(t):  # (B,S,H) -> (B,nh,S,hd)
        return t.reshape(B, S, NUM_HEADS, HEAD_DIM).transpose(0, 2, 1, 3)

    q, k, v = split(q), split(k), split(v)
    scores = jnp.einsum("bhqd,bhkd->bhqk", q, k, precision=hp) / math.sqrt(HEAD_DIM)
    scores = scores + mask                                  # (B,1,1,S) broadcasts
    probs = jax.nn.softmax(scores, axis=-1)
    ctx = jnp.einsum("bhqk,bhkd->bhqd", probs, v, precision=hp)
    ctx = ctx.transpose(0, 2, 1, 3).reshape(B, S, H)
    return ctx, probs


if __name__ == "__main__":
    key = jax.random.PRNGKey(0)
    k_x, k_q, k_k, k_v, k_bq, k_bk, k_bv, k_m = jax.random.split(key, 8)

    # Parameters (deterministic init).  PyTorch Linear weight is (out, in);
    # we build (in, out) directly for x @ W.
    scale = 1.0 / math.sqrt(HIDDEN)
    wq = jax.random.uniform(k_q, (HIDDEN, HIDDEN), jnp.float32, -scale, scale)
    wk = jax.random.uniform(k_k, (HIDDEN, HIDDEN), jnp.float32, -scale, scale)
    wv = jax.random.uniform(k_v, (HIDDEN, HIDDEN), jnp.float32, -scale, scale)
    bq = jax.random.uniform(k_bq, (1, HIDDEN), jnp.float32, -scale, scale)
    bk = jax.random.uniform(k_bk, (1, HIDDEN), jnp.float32, -scale, scale)
    bv = jax.random.uniform(k_bv, (1, HIDDEN), jnp.float32, -scale, scale)

    # One-time (outside the per-call hot path): fuse/pad QKV params, fold the scale.
    w_qkv, b_qkv = fuse_qkv_params(wq, bq, wk, bk, wv, bv)
    w_qkv, b_qkv = jax.block_until_ready((w_qkv, b_qkv))

    # Inputs
    x = jax.random.normal(k_x, (BATCH, SEQ, HIDDEN), jnp.float32)
    # Additive BERT-style key-padding mask, kept compact: (B, 1, 1, S).
    keep = jax.random.bernoulli(k_m, 0.9, (BATCH, 1, 1, SEQ))
    mask = jnp.where(keep, 0.0, -1e9).astype(jnp.float32)

    ctx, probs = multi_head_self_attention(x, w_qkv, b_qkv, mask)
    jax.block_until_ready((ctx, probs))

    ctx_ref, probs_ref = reference(x, wq, bq, wk, bk, wv, bv, mask)
    np.testing.assert_allclose(np.asarray(ctx), np.asarray(ctx_ref), rtol=1e-5, atol=1e-5)
    np.testing.assert_allclose(np.asarray(probs), np.asarray(probs_ref), rtol=1e-5, atol=1e-5)

    print("KERNEL_OK")
</pallas_src>

<mosaic_0001>
module attributes {stable_mosaic.version = 11 : i64} {
  func.func @mhsa_kernel(%arg0: memref<2x8x32xf32, #tpu.memory_space<vmem>>, %arg1: memref<32x128xf32, #tpu.memory_space<vmem>>, %arg2: memref<1x128xf32, #tpu.memory_space<vmem>>, %arg3: memref<2x1x1x8xf32, #tpu.memory_space<vmem>>, %arg4: memref<2x8x32xf32, #tpu.memory_space<vmem>>, %arg5: memref<2x4x8x8xf32, #tpu.memory_space<vmem>>) attributes {dimension_semantics = [], scalar_prefetch = 0 : i64, scratch_operands = 0 : i64, tpu.core_type = #tpu.core_type<tc>} {
    %c0 = arith.constant 0 : index
    %c0_0 = arith.constant 0 : index
    %c0_1 = arith.constant 0 : index
    %0 = vector.load %arg0[%c0, %c0_0, %c0_1] : memref<2x8x32xf32, #tpu.memory_space<vmem>>, vector<2x8x32xf32>
    %1 = vector.shape_cast %0 : vector<2x8x32xf32> to vector<16x32xf32>
    %c0_2 = arith.constant 0 : index
    %c0_3 = arith.constant 0 : index
    %2 = vector.load %arg1[%c0_2, %c0_3] : memref<32x128xf32, #tpu.memory_space<vmem>>, vector<32x128xf32>
    %cst = arith.constant dense<0.000000e+00> : vector<16x128xf32>
    %3 = tpu.matmul %1, %2, %cst {dimension_numbers = #tpu.dot_dimension_numbers<[1], [0], [0], [1], [0, 0, 1, 1], [], []>} : vector<16x32xf32>, vector<32x128xf32>, vector<16x128xf32> -> vector<16x128xf32>
    %c0_4 = arith.constant 0 : index
    %c0_5 = arith.constant 0 : index
    %4 = vector.load %arg2[%c0_4, %c0_5] : memref<1x128xf32, #tpu.memory_space<vmem>>, vector<1x128xf32>
    %5 = vector.broadcast %4 : vector<1x128xf32> to vector<16x128xf32>
    %6 = arith.addf %3, %5 : vector<16x128xf32>
    %7 = vector.extract_strided_slice %6 {offsets = [0, 0], sizes = [16, 24], strides = [1, 1]} : vector<16x128xf32> to vector<16x24xf32>
    %8 = vector.shape_cast %7 : vector<16x24xf32> to vector<2x8x24xf32>
    %9 = vector.extract_strided_slice %6 {offsets = [0, 24], sizes = [16, 24], strides = [1, 1]} : vector<16x128xf32> to vector<16x24xf32>
    %10 = vector.shape_cast %9 : vector<16x24xf32> to vector<2x8x24xf32>
    %11 = vector.extract_strided_slice %6 {offsets = [0, 48], sizes = [16, 24], strides = [1, 1]} : vector<16x128xf32> to vector<16x24xf32>
    %12 = vector.shape_cast %11 : vector<16x24xf32> to vector<2x8x24xf32>
    %13 = vector.extract_strided_slice %6 {offsets = [0, 72], sizes = [16, 24], strides = [1, 1]} : vector<16x128xf32> to vector<16x24xf32>
    %14 = vector.shape_cast %13 : vector<16x24xf32> to vector<2x8x24xf32>
    %15 = vector.shape_cast %8 : vector<2x8x24xf32> to vector<2x1x8x24xf32>
    %16 = vector.shape_cast %10 : vector<2x8x24xf32> to vector<2x1x8x24xf32>
    %17 = vector.shape_cast %12 : vector<2x8x24xf32> to vector<2x1x8x24xf32>
    %18 = vector.shape_cast %14 : vector<2x8x24xf32> to vector<2x1x8x24xf32>
    %19 = tpu.concatenate %15, %16, %17, %18 in 1 : vector<2x1x8x24xf32>, vector<2x1x8x24xf32>, vector<2x1x8x24xf32>, vector<2x1x8x24xf32> -> vector<2x4x8x24xf32>
    %20 = vector.shape_cast %19 : vector<2x4x8x24xf32> to vector<8x8x24xf32>
    %21 = vector.extract_strided_slice %20 {offsets = [0, 0, 0], sizes = [8, 8, 8], strides = [1, 1, 1]} : vector<8x8x24xf32> to vector<8x8x8xf32>
    %22 = vector.extract_strided_slice %20 {offsets = [0, 0, 8], sizes = [8, 8, 8], strides = [1, 1, 1]} : vector<8x8x24xf32> to vector<8x8x8xf32>
    %23 = vector.extract_strided_slice %20 {offsets = [0, 0, 16], sizes = [8, 8, 8], strides = [1, 1, 1]} : vector<8x8x24xf32> to vector<8x8x8xf32>
    "tpu.trace_start"() <{level = 10 : i32, message = "nqd,nkd->nqk"}> : () -> ()
    %cst_6 = arith.constant dense<0.000000e+00> : vector<8x8x8xf32>
    %24 = tpu.matmul %21, %22, %cst_6 {dimension_numbers = #tpu.dot_dimension_numbers<[2], [2], [1], [1], [0, 0, 0, 1, 1, 1], [0], [0]>} : vector<8x8x8xf32>, vector<8x8x8xf32>, vector<8x8x8xf32> -> vector<8x8x8xf32>
    "tpu.trace_stop"() : () -> ()
    %c0_7 = arith.constant 0 : index
    %c0_8 = arith.constant 0 : index
    %c0_9 = arith.constant 0 : index
    %c0_10 = arith.constant 0 : index
    %25 = vector.load %arg3[%c0_7, %c0_8, %c0_9, %c0_10] : memref<2x1x1x8xf32, #tpu.memory_space<vmem>>, vector<2x1x1x8xf32>
    %26 = vector.shape_cast %25 : vector<2x1x1x8xf32> to vector<2x1x1x8xf32>
    %27 = vector.broadcast %26 : vector<2x1x1x8xf32> to vector<2x4x1x8xf32>
    %28 = vector.shape_cast %27 : vector<2x4x1x8xf32> to vector<8x1x8xf32>
    %29 = vector.broadcast %28 : vector<8x1x8xf32> to vector<8x8x8xf32>
    %30 = arith.addf %24, %29 : vector<8x8x8xf32>
    %cst_11 = arith.constant dense<0xFF800000> : vector<8x8xf32>
    %31 = vector.multi_reduction <maximumf>, %30, %cst_11 [2] : vector<8x8x8xf32> to vector<8x8xf32>
    %32 = vector.shape_cast %31 : vector<8x8xf32> to vector<8x8x1xf32>
    %33 = vector.broadcast %32 : vector<8x8x1xf32> to vector<8x8x8xf32>
    %34 = arith.subf %30, %33 : vector<8x8x8xf32>
    %35 = math.exp %34 : vector<8x8x8xf32>
    %cst_12 = arith.constant dense<0.000000e+00> : vector<8x8xf32>
    %36 = vector.multi_reduction <add>, %35, %cst_12 [2] : vector<8x8x8xf32> to vector<8x8xf32>
    %37 = vector.shape_cast %36 : vector<8x8xf32> to vector<8x8x1xf32>
    %38 = vector.broadcast %37 : vector<8x8x1xf32> to vector<8x8x8xf32>
    %39 = arith.divf %35, %38 : vector<8x8x8xf32>
    "tpu.trace_start"() <{level = 10 : i32, message = "nqk,nkd->nqd"}> : () -> ()
    %cst_13 = arith.constant dense<0.000000e+00> : vector<8x8x8xf32>
    %40 = tpu.matmul %39, %23, %cst_13 {dimension_numbers = #tpu.dot_dimension_numbers<[2], [1], [1], [2], [0, 0, 0, 1, 1, 2], [0], [0]>} : vector<8x8x8xf32>, vector<8x8x8xf32>, vector<8x8x8xf32> -> vector<8x8x8xf32>
    "tpu.trace_stop"() : () -> ()
    %41 = vector.shape_cast %39 : vector<8x8x8xf32> to vector<2x4x8x8xf32>
    %c0_14 = arith.constant 0 : index
    %c0_15 = arith.constant 0 : index
    %c0_16 = arith.constant 0 : index
    %c0_17 = arith.constant 0 : index
    %42 = vector.load %arg5[%c0_14, %c0_15, %c0_16, %c0_17] : memref<2x4x8x8xf32, #tpu.memory_space<vmem>>, vector<2x4x8x8xf32>
    tpu.vector_store %arg5[%c0_14, %c0_15, %c0_16, %c0_17], %41 {strides = array<i32>} : memref<2x4x8x8xf32, #tpu.memory_space<vmem>>, vector<2x4x8x8xf32>,
    %43 = vector.shape_cast %40 : vector<8x8x8xf32> to vector<2x4x8x8xf32>
    %44 = vector.extract_strided_slice %43 {offsets = [0, 0, 0, 0], sizes = [2, 1, 8, 8], strides = [1, 1, 1, 1]} : vector<2x4x8x8xf32> to vector<2x1x8x8xf32>
    %45 = vector.shape_cast %44 : vector<2x1x8x8xf32> to vector<2x8x8xf32>
    %46 = vector.extract_strided_slice %43 {offsets = [0, 1, 0, 0], sizes = [2, 1, 8, 8], strides = [1, 1, 1, 1]} : vector<2x4x8x8xf32> to vector<2x1x8x8xf32>
    %47 = vector.shape_cast %46 : vector<2x1x8x8xf32> to vector<2x8x8xf32>
    %48 = vector.extract_strided_slice %43 {offsets = [0, 2, 0, 0], sizes = [2, 1, 8, 8], strides = [1, 1, 1, 1]} : vector<2x4x8x8xf32> to vector<2x1x8x8xf32>
    %49 = vector.shape_cast %48 : vector<2x1x8x8xf32> to vector<2x8x8xf32>
    %50 = vector.extract_strided_slice %43 {offsets = [0, 3, 0, 0], sizes = [2, 1, 8, 8], strides = [1, 1, 1, 1]} : vector<2x4x8x8xf32> to vector<2x1x8x8xf32>
    %51 = vector.shape_cast %50 : vector<2x1x8x8xf32> to vector<2x8x8xf32>
    %52 = tpu.concatenate %45, %47, %49, %51 in 2 : vector<2x8x8xf32>, vector<2x8x8xf32>, vector<2x8x8xf32>, vector<2x8x8xf32> -> vector<2x8x32xf32>
    %c0_18 = arith.constant 0 : index
    %c0_19 = arith.constant 0 : index
    %c0_20 = arith.constant 0 : index
    %53 = vector.load %arg4[%c0_18, %c0_19, %c0_20] : memref<2x8x32xf32, #tpu.memory_space<vmem>>, vector<2x8x32xf32>
    tpu.vector_store %arg4[%c0_18, %c0_19, %c0_20], %52 {strides = array<i32>} : memref<2x8x32xf32, #tpu.memory_space<vmem>>, vector<2x8x32xf32>,
    return
  }
}

</mosaic_0001>

<bundles_post_ra>
// kernel: tpu_custom_call.1
= control target key start
LH: loop header
LB: loop body
LE: loop exit
PB: predicated region body
PF: predicated region fallthrough
CT: control target
= control target key end

     0   :  { %11 = vsyncpa [#allocation3], 0  ;;  %s1266_s0 = inlined_call_operand.hbm [shape: f32[2,8,32], index: 0, kind: input, shape index: {}]   ;;  %s1267_s1 = inlined_call_operand.hbm [shape: f32[32,128], index: 1, kind: input, shape index: {}]   ;;  %s1268_s2 = inlined_call_operand.hbm [shape: f32[1,128], index: 2, kind: input, shape index: {}]   ;;  %s1269_s3 = inlined_call_operand.vmem [shape: f32[2,1,1,8], index: 3, kind: input, shape index: {}]   ;;  %s1270_s4 = inlined_call_operand.hbm [shape: f32[2,8,32], index: 4, kind: output, shape index: {0}]   ;;  %s1271_s5 = inlined_call_operand.hbm [shape: f32[2,4,8,8], index: 5, kind: output, shape index: {1}]  }
   0x1   :  { %12 = vsyncpa [#allocation6], 0 }
   0x2   :  { %13 = vsyncpa [#allocation4], 0 }
   0x3   :  { %14 = vsyncpa [#allocation10], 0  ;;  %s32_s20 = sshll.u32 %s1267_s1, 4  ;;  %s1035_s21 = smov [#allocation5]   ;;  %s33_s20 = int_to_ptr.hbm [resolvable:$true] %s32_s20 }
   0x4   :  { %s34_s22 = sshll.u32 %s1035_s21, 4  ;;  %s19_s25 = sshll.u32 %s1266_s0, 4  ;;  %s35_s22 = int_to_ptr.vmem [resolvable:$true] %s34_s22  ;;  %s20_s25 = int_to_ptr.hbm [resolvable:$true] %s19_s25 }
   0x5   :  { %s1036_s26 = smov 128   ;;  %s1037_s27 = smov 8  }
   0x6   :  { %40 = dma.hbm_to_vmem [thread:$0]  %s33_s20, 512, %s35_s22, [#allocation6], %s1036_s26, %s1036_s26, %s1037_s27  }
   0x7   :  { %s1038_s28 = smov [#allocation2]   ;;  %s46_s1 = sshll.u32 %s1268_s2, 4  ;;  %s47_s1 = int_to_ptr.hbm [resolvable:$true] %s46_s1 }
   0x8   :  { %s21_s29 = sshll.u32 %s1038_s28, 4  ;;  %s1039_s0 = smov [#allocation7]   ;;  %s22_s29 = int_to_ptr.vmem [resolvable:$true] %s21_s29 }
   0x9   :  { %27 = dma.hbm_to_vmem [thread:$0]  %s20_s25, 256, %s22_s29, [#allocation3], %s1036_s26, %s1036_s26, %s1037_s27  }
   0xa   :  { %s48_s7 = sshll.u32 %s1039_s0, 4  ;;  %s49_s7 = int_to_ptr.vmem [resolvable:$true] %s48_s7 }
   0xb   :  { %51 = dma.hbm_to_vmem [thread:$0]  %s47_s1, 16, %s49_s7, [#allocation6]  }
   0xc   :  { %1027 = dma.done.wait [#allocation3], 256  }
   0xd   :  { %1028 = vsyncadd [#allocation3], 4294967040 }
   0xe   :  { %1029 = dma.done.wait [#allocation6], 528  }
   0xf   :  { %1030 = vsyncadd [#allocation6], 4294966768  ;;  %v71_v0 = vld [vmem:[#allocation5 + $0x18] sm:$0xff]  ;;  %v70_v1 = vld [vmem:[#allocation5 + $0x10] sm:$0xff]  ;;  %vm76_vm0 = vcmask 261120   ;;  %s1040_s2 = smov 56  }
  0x10   :  { %95 = vmatpush.msra.mxu0 %v71_v0  ;;  %v69_v2 = vld [vmem:[#allocation5 + $0x8] sm:$0xff]  ;;  %v68_v3 = vld [vmem:[#allocation5] sm:$0xff]  ;;  %v66_v4 = vld [vmem:[#allocation2] sm:$0xff]  ;;  %s1041_s8 = smov 104   ;;  %s1042_s9 = smov 80   ;;  %vm130_vm1 = vcmask 64512  }
  0x11   :  { %v67_v5 = vld [vmem:[#allocation2 + $0x8] sm:$0xff]  ;;  %v872_v6 = vld [vmem:[#allocation7] ss:$0 sm:$0xff]  ;;  %s1043_s10 = smov 120   ;;  %v873_v26 = vld [vmem:[%s1269_s3] ss:$0 sm:$0xff] }
  0x12   :  { %96 = vmatpush.msra.mxu0 %v70_v1  ;;  %v874_v32 = vld [vmem:[%s1269_s3 + $0x1] ss:$0 sm:$0xff]  ;;  %s1044_s3 = smov 112   ;;  %s1045_s15 = smov [#allocation9]  }
  0x13   :  { %s796_s16 = sshll.u32 %s1045_s15, 4  ;;  %s798_s19 = sshll.u32 %s1271_s5, 4  ;;  %s797_s16 = int_to_ptr.vmem [resolvable:$true] %s796_s16  ;;  %s799_s19 = int_to_ptr.hbm [resolvable:$true] %s798_s19 }
  0x14   :  { %97 = vmatpush.msra.mxu0 %v69_v2  ;;  %s1046_s20 = smov 24   ;;  %s1047_s21 = smov 16  }
  0x15   :  { %s1048_s5 = smov [#allocation8]   ;;  %s785_s25 = sshll.u32 %s1270_s4, 4  ;;  %s786_s25 = int_to_ptr.hbm [resolvable:$true] %s785_s25 }
  0x16   :  { %98 = vmatpush.msra.mxu0 %v68_v3  ;;  %s783_s22 = sshll.u32 %s1048_s5, 4  ;;  %s784_s22 = int_to_ptr.vmem [resolvable:$true] %s783_s22 }
  0x17   :  { %817 = vmatmul.msk.f32.vlgmr.msra.gmra.mxu0 %vm76_vm0, %v66_v4 }
  0x1f   :  { %818 = vmatmul.msk.f32.gmra.mxu0 %vm76_vm0, %v67_v5 }
  0x94   :  { %v100_v7 = vpop.f32.mrf.mxu0 }
  0x95   :  { %v1096_v8 = vadd.f32 %v872_v6, %v100_v7 }
  0x97   :  { %116 = vrot.lane.b32.xlu1 %v1096_v8, %s1040_s2  ;;  %108 = vrot.lane.b32.xlu0 %v1096_v8, %s1041_s8 }
  0x9c   :  { %v103_v9 = vpop.f32.mrf.mxu0 }
  0x9d   :  { %v1100_v10 = vadd.f32 %v872_v6, %v103_v9 }
  0x9f   :  { %118 = vrot.lane.b32.xlu1 %v1100_v10, %s1040_s2  ;;  %112 = vrot.lane.b32.xlu0 %v1096_v8, %s1042_s9 }
  0xa0   :  { %110 = vrot.lane.b32.xlu2 %v1100_v10, %s1041_s8 }
  0xa7   :  { %128 = vrot.lane.b32.xlu1 %v1096_v8, %s1043_s10 }
  0xa8   :  { %114 = vrot.lane.b32.xlu2 %v1100_v10, %s1042_s9 }
  0xb0   :  { %233 = vrot.lane.b32.xlu2 %v1100_v10, %s1043_s10 }
  0xfa   :  { %v1108_v11 = vpop.permute.xlu2 %110 }
 0x102   :  { %v1116_v14 = vpop.permute.xlu2 %114 }
 0x109   :  { %v1110_v12 = vpop.permute.xlu1 %116  ;;  %v1112_v13 = vpop.permute.xlu0 %108 }
 0x10a   :  { %207 = vrot.lane.b32.xlu1 %v1110_v12, %s1043_s10  ;;  %155 = vrot.lane.b32.xlu0 %v1112_v13, %s1043_s10  ;;  %v234_v18 = vpop.permute.xlu2 %233 }
 0x111   :  { %v1118_v15 = vpop.permute.xlu1 %118  ;;  %v1120_v16 = vpop.permute.xlu0 %112 }
 0x112   :  { %285 = vrot.lane.b32.xlu1 %v1116_v14, %s1043_s10  ;;  %181 = vrot.lane.b32.xlu0 %v1120_v16, %s1043_s10 }
 0x113   :  { %311 = vrot.lane.b32.xlu2 %v1118_v15, %s1043_s10 }
 0x119   :  { %v129_v17 = vpop.permute.xlu1 %128 }
 0x11a   :  { %819 = vmatpush.xpose.msk.msra.mxu1 %vm130_vm1, %v129_v17  ;;  %259 = vrot.lane.b32.xlu0 %v1108_v11, %s1043_s10 }
 0x11d   :  { %820 = vmatmul.msk.f32.vlgmr.msra.gmra.mxu1 %vm130_vm1, %v1096_v8 }
 0x16d   :  { %v312_v21 = vpop.permute.xlu2 %311 }
 0x17c   :  { %v208_v19 = vpop.permute.xlu1 %207  ;;  %v156_v20 = vpop.permute.xlu0 %155 }
 0x17d   :  { %821 = vmatpush.xpose.msk.msra.mxu2 %vm130_vm1, %v156_v20  ;;  %825 = vmatpush.xpose.msk.msrb.mxu1 %vm130_vm1, %v208_v19 }
 0x180   :  { %822 = vmatmul.msk.f32.vlgmr.msra.gmra.mxu2 %vm130_vm1, %v1112_v13  ;;  %826 = vmatmul.msk.f32.vlgmr.msrb.gmra.mxu1 %vm130_vm1, %v1110_v12 }
 0x181   :  { %827 = vmatpush.xpose.msk.msrb.mxu2 %vm130_vm1, %v234_v18 }
 0x184   :  { %v286_v22 = vpop.permute.xlu1 %285  ;;  %v182_v23 = vpop.permute.xlu0 %181 }
 0x185   :  { %833 = vmatpush.xpose.msk.msra.mxu2 %vm130_vm1, %v312_v21  ;;  %823 = vmatpush.xpose.msk.msra.mxu3 %vm130_vm1, %v182_v23 }
 0x186   :  { %831 = vmatpush.xpose.msk.msra.mxu1 %vm130_vm1, %v286_v22 }
 0x188   :  { %824 = vmatmul.msk.f32.vlgmr.msra.gmra.mxu3 %vm130_vm1, %v1120_v16  ;;  %828 = vmatmul.msk.f32.vlgmr.msrb.gmra.mxu2 %vm130_vm1, %v1100_v10 }
 0x189   :  { %832 = vmatmul.msk.f32.vlgmr.msra.gmra.mxu1 %vm130_vm1, %v1116_v14 }
 0x18c   :  { %v260_v24 = vpop.permute.xlu0 %259 }
 0x18d   :  { %829 = vmatpush.xpose.msk.msrb.mxu3 %vm130_vm1, %v260_v24 }
 0x190   :  { %830 = vmatmul.msk.f32.vlgmr.msrb.gmra.mxu3 %vm130_vm1, %v1108_v11  ;;  %834 = vmatmul.msk.f32.vlgmr.msra.gmra.mxu2 %vm130_vm1, %v1118_v15 }
 0x19a   :  { %v152_v25 = vpop.f32.mrf.mxu1 }
 0x19b   :  { %v1160_v41 = vadd.f32 %v873_v26, %v152_v25  ;;  %v857_v25 = vpack.i.bf16 %v1112_v13, %v1110_v12 }
 0x19d   :  { %v337_v45 = vsel %vm130_vm1, %v1160_v41, -inf }
 0x1fd   :  { %v230_v27 = vpop.f32.mrf.mxu1 }
 0x1fe   :  { %v231_v28 = vadd.f32 %v873_v26, %v230_v27  ;;  %v862_v27 = vpack.i.bf16 %v1118_v15, %v1120_v16 }
 0x200   :  { %v346_v29 = vsel %vm130_vm1, %v231_v28, -inf }
 0x201   :  { %347 = vmax.xlane.f32.xlu2 %v346_v29 }
 0x203   :  { %v178_v30 = vpop.f32.mrf.mxu2 }
 0x204   :  { %v179_v31 = vadd.f32 %v873_v26, %v178_v30 }
 0x206   :  { %v340_v33 = vsel %vm130_vm1, %v179_v31, -inf  ;;  %v308_v34 = vpop.f32.mrf.mxu1 }
 0x207   :  { %341 = vmax.xlane.f32.xlu0 %v340_v33  ;;  %v309_v35 = vadd.f32 %v874_v32, %v308_v34 }
 0x209   :  { %v355_v39 = vsel %vm130_vm1, %v309_v35, -inf }
 0x20b   :  { %v204_v36 = vpop.f32.mrf.mxu3  ;;  %v256_v37 = vpop.f32.mrf.mxu2 }
 0x20c   :  { %v205_v38 = vadd.f32 %v873_v26, %v204_v36  ;;  %v257_v49 = vadd.f32 %v874_v32, %v256_v37  ;;  %v867_v26 = vpack.i.bf16 %v1116_v14, %v1108_v11 }
 0x20e   :  { %v343_v40 = vsel %vm130_vm1, %v205_v38, -inf  ;;  %v349_v50 = vsel %vm130_vm1, %v257_v49, -inf }
 0x20f   :  { %356 = vmax.xlane.f32.xlu0 %v355_v39  ;;  %344 = vmax.xlane.f32.xlu1 %v343_v40 }
 0x213   :  { %v334_v42 = vpop.f32.mrf.mxu2  ;;  %v282_v46 = vpop.f32.mrf.mxu3 }
 0x214   :  { %v335_v43 = vadd.f32 %v874_v32, %v334_v42  ;;  %v283_v47 = vadd.f32 %v874_v32, %v282_v46 }
 0x216   :  { %v358_v44 = vsel %vm130_vm1, %v335_v43, -inf  ;;  %v352_v48 = vsel %vm130_vm1, %v283_v47, -inf }
 0x217   :  { %359 = vmax.xlane.f32.xlu2 %v358_v44  ;;  %338 = vmax.xlane.f32.xlu1 %v337_v45 }
 0x21f   :  { %353 = vmax.xlane.f32.xlu2 %v352_v48 }
 0x227   :  { %350 = vmax.xlane.f32.xlu2 %v349_v50 }
 0x274   :  { %v348_v51 = vpop.xlane.xlu2 %347 }
 0x275   :  { %v364_v52 = vsub.f32 %v231_v28, %v348_v51 }
 0x277   :  { %v375_v53 = vmul.f32 1.442695, %v364_v52 }
 0x279   :  { %875 = vpow2.f32 %v375_v53 }
 0x27a   :  { %v342_v54 = vpop.xlane.xlu0 %341 }
 0x27b   :  { %v362_v55 = vsub.f32 %v179_v31, %v342_v54 }
 0x27d   :  { %v371_v56 = vmul.f32 1.442695, %v362_v55 }
 0x27f   :  { %v1167_v57 = vpop.eup %875  ;;  %877 = vpow2.f32 %v371_v56 }
 0x280   :  { %v394_v58 = vsel %vm130_vm1, %v1167_v57, 0.0 }
 0x281   :  { %395 = vadd.xlane.f32.xlu0 %v394_v58 }
 0x282   :  { %v345_v59 = vpop.xlane.xlu1 %344  ;;  %v357_v60 = vpop.xlane.xlu0 %356 }
 0x283   :  { %v363_v61 = vsub.f32 %v205_v38, %v345_v59  ;;  %v367_v0 = vsub.f32 %v309_v35, %v357_v60 }
 0x285   :  { %v1171_v62 = vpop.eup %877  ;;  %v373_v63 = vmul.f32 1.442695, %v363_v61  ;;  %v381_v2 = vmul.f32 1.442695, %v367_v0 }
 0x286   :  { %v388_v1 = vsel %vm130_vm1, %v1171_v62, 0.0 }
 0x287   :  { %879 = vpow2.f32 %v373_v63  ;;  %389 = vadd.xlane.f32.xlu1 %v388_v1 }
 0x288   :  { %881 = vpow2.f32 %v381_v2 }
 0x28a   :  { %v360_v3 = vpop.xlane.xlu2 %359  ;;  %v339_v28 = vpop.xlane.xlu1 %338 }
 0x28b   :  { %v368_v4 = vsub.f32 %v335_v43, %v360_v3  ;;  %v361_v29 = vsub.f32 %v1160_v41, %v339_v28 }
 0x28d   :  { %v1175_v5 = vpop.eup %879  ;;  %v383_v6 = vmul.f32 1.442695, %v368_v4  ;;  %v369_v30 = vmul.f32 1.442695, %v361_v29 }
 0x28e   :  { %v391_v7 = vsel %vm130_vm1, %v1175_v5, 0.0  ;;  %v1179_v17 = vpop.eup %881 }
 0x28f   :  { %883 = vpow2.f32 %v383_v6  ;;  %392 = vadd.xlane.f32.xlu2 %v391_v7  ;;  %v403_v22 = vsel %vm130_vm1, %v1179_v17, 0.0 }
 0x292   :  { %v354_v9 = vpop.xlane.xlu2 %353 }
 0x293   :  { %v366_v18 = vsub.f32 %v283_v47, %v354_v9 }
 0x295   :  { %v1181_v19 = vpop.eup %883  ;;  %v379_v20 = vmul.f32 1.442695, %v366_v18 }
 0x296   :  { %v406_v21 = vsel %vm130_vm1, %v1181_v19, 0.0 }
 0x297   :  { %885 = vpow2.f32 %v379_v20  ;;  %407 = vadd.xlane.f32.xlu0 %v406_v21  ;;  %404 = vadd.xlane.f32.xlu2 %v403_v22 }
 0x298   :  { %887 = vpow2.f32 %v369_v30 }
 0x29a   :  { %v351_v12 = vpop.xlane.xlu2 %350 }
 0x29b   :  { %v365_v13 = vsub.f32 %v257_v49, %v351_v12 }
 0x29d   :  { %v1187_v23 = vpop.eup %885  ;;  %v377_v32 = vmul.f32 1.442695, %v365_v13 }
 0x29e   :  { %v400_v24 = vsel %vm130_vm1, %v1187_v23, 0.0  ;;  %v1200_v31 = vpop.eup %887 }
 0x29f   :  { %401 = vadd.xlane.f32.xlu1 %v400_v24  ;;  %v385_v11 = vsel %vm130_vm1, %v1200_v31, 0.0  ;;  %889 = vpow2.f32 %v377_v32 }
 0x2a5   :  { %v1204_v14 = vpop.eup %889 }
 0x2ab   :  { %858 = vrot.lane.b32.xlu0 %v857_v25, %s1044_s3 }
 0x2af   :  { %868 = vrot.lane.b32.xlu2 %v867_v26, %s1044_s3 }
 0x2b7   :  { %529 = vrot.lane.b32.xlu2 %v1096_v8, %s1044_s3  ;;  %v397_v8 = vsel %vm130_vm1, %v1204_v14, 0.0 }
 0x2b8   :  { %863 = vrot.lane.b32.xlu1 %v862_v27, %s1044_s3 }
 0x2bf   :  { %633 = vrot.lane.b32.xlu2 %v1100_v10, %s1044_s3 }
 0x2d5   :  { %386 = vadd.xlane.f32.xlu0 %v385_v11 }
 0x2e2   :  { %398 = vadd.xlane.f32.xlu1 %v397_v8 }
 0x2f4   :  { %v396_v10 = vpop.xlane.xlu0 %395 }
 0x2f5   :  { %891 = vrcp.f32 %v396_v10  ;;  %v465_v35 = vand.u32 2147483648, %v396_v10  ;;  %v463_v37 = vand.u32 2147483647, %v396_v10  ;;  %vm459_vm3 = vweird.f32 %v396_v10 }
 0x2f7   :  { %v466_v42 = vor.u32 1.1754944e-38, %v465_v35  ;;  %vm464_vm5 = vcmp.eq.f32.partialorder %v463_v37, 8.507059e+37 }
 0x2fa   :  { %v390_v15 = vpop.xlane.xlu1 %389 }
 0x2fb   :  { %v892_v16 = vpop.eup %891  ;;  %893 = vrcp.f32 %v390_v15  ;;  %v435_v48 = vand.u32 2147483648, %v390_v15  ;;  %vm429_vm7 = vweird.f32 %v390_v15  ;;  %v433_v50 = vand.u32 2147483647, %v390_v15 }
 0x2fc   :  { %v455_v33 = vmul.f32 %v892_v16, %v396_v10  ;;  %vm460_vm2 = vweird.f32 %v892_v16 }
 0x2fd   :  { %vm461_vm4 = vmor %vm459_vm3, %vm460_vm2  ;;  %v436_v56 = vor.u32 1.1754944e-38, %v435_v48  ;;  %vm434_vm9 = vcmp.eq.f32.partialorder %v433_v50, 8.507059e+37 }
 0x2fe   :  { %v456_v34 = vsub.f32 1.0, %v455_v33 }
 0x300   :  { %v457_v36 = vmul.f32 %v892_v16, %v456_v34 }
 0x301   :  { %v894_v38 = vpop.eup %893 }
 0x302   :  { %v458_v39 = vadd.f32 %v892_v16, %v457_v36  ;;  %v425_v40 = vmul.f32 %v894_v38, %v390_v15  ;;  %v393_v41 = vpop.xlane.xlu2 %392  ;;  %vm430_vm6 = vweird.f32 %v894_v38 }
 0x303   :  { %895 = vrcp.f32 %v393_v41  ;;  %vm431_vm8 = vmor %vm429_vm7, %vm430_vm6  ;;  %v448_v61 = vand.u32 2147483647, %v393_v41  ;;  %vm444_vm11 = vweird.f32 %v393_v41 }
 0x304   :  { %v462_v43 = vsel %vm461_vm4, %v892_v16, %v458_v39  ;;  %v426_v44 = vsub.f32 1.0, %v425_v40 }
 0x305   :  { %v467_v45 = vsel %vm464_vm5, %v466_v42, %v462_v43  ;;  %vm449_vm13 = vcmp.eq.f32.partialorder %v448_v61, 8.507059e+37 }
 0x306   :  { %v427_v46 = vmul.f32 %v894_v38, %v426_v44  ;;  %v1209_v47 = vmul.f32 %v1167_v57, %v467_v45  ;;  %v450_v57 = vand.u32 2147483648, %v393_v41 }
 0x308   :  { %v428_v49 = vadd.f32 %v894_v38, %v427_v46  ;;  %740 = vst.msk [vmem:[#allocation9 + $0x18] sm:$0xff] %vm130_vm1, %v1209_v47  ;;  %v451_v2 = vor.u32 1.1754944e-38, %v450_v57 }
 0x309   :  { %v896_v51 = vpop.eup %895 }
 0x30a   :  { %v440_v52 = vmul.f32 %v896_v51, %v393_v41  ;;  %v405_v53 = vpop.xlane.xlu2 %404  ;;  %v408_v54 = vpop.xlane.xlu0 %407  ;;  %v432_v55 = vsel %vm431_vm8, %v894_v38, %v428_v49  ;;  %vm445_vm10 = vweird.f32 %v896_v51 }
 0x30b   :  { %897 = vrcp.f32 %v405_v53  ;;  %v437_v59 = vsel %vm434_vm9, %v436_v56, %v432_v55  ;;  %vm446_vm12 = vmor %vm444_vm11, %vm445_vm10  ;;  %v510_v21 = vand.u32 2147483648, %v405_v53  ;;  %v508_v26 = vand.u32 2147483647, %v405_v53 }
 0x30c   :  { %v441_v58 = vsub.f32 1.0, %v440_v52  ;;  %899 = vrcp.f32 %v408_v54  ;;  %v1214_v63 = vmul.f32 %v1171_v62, %v437_v59  ;;  %v525_v27 = vand.u32 2147483648, %v408_v54 }
 0x30d   :  { %v523_v29 = vand.u32 2147483647, %v408_v54  ;;  %vm504_vm2 = vweird.f32 %v405_v53  ;;  %v511_v13 = vor.u32 1.1754944e-38, %v510_v21  ;;  %vm519_vm4 = vweird.f32 %v408_v54 }
 0x30e   :  { %v442_v60 = vmul.f32 %v896_v51, %v441_v58  ;;  %738 = vst.msk [vmem:[#allocation9 + $0x8] sm:$0xff] %vm130_vm1, %v1214_v63  ;;  %vm509_vm5 = vcmp.eq.f32.partialorder %v508_v26, 8.507059e+37 }
 0x30f   :  { %vm524_vm7 = vcmp.eq.f32.partialorder %v523_v29, 8.507059e+37 }
 0x310   :  { %v443_v0 = vadd.f32 %v896_v51, %v442_v60 }
 0x311   :  { %v898_v1 = vpop.eup %897 }
 0x312   :  { %v900_v3 = vpop.eup %899  ;;  %v447_v4 = vsel %vm446_vm12, %v896_v51, %v443_v0  ;;  %v500_v6 = vmul.f32 %v898_v1, %v405_v53  ;;  %v402_v7 = vpop.xlane.xlu1 %401  ;;  %vm505_vm14 = vweird.f32 %v898_v1 }
 0x313   :  { %v1218_v9 = vpop.permute.xlu2 %868  ;;  %v452_v18 = vsel %vm449_vm13, %v451_v2, %v447_v4  ;;  %v515_v20 = vmul.f32 %v900_v3, %v408_v54  ;;  %901 = vrcp.f32 %v402_v7  ;;  %vm520_vm15 = vweird.f32 %v900_v3  ;;  %vm506_vm3 = vmor %vm504_vm2, %vm505_vm14 }
 0x314   :  { %v501_v62 = vsub.f32 1.0, %v500_v6  ;;  %v1221_v24 = vmul.f32 %v1175_v5, %v452_v18  ;;  %vm521_vm6 = vmor %vm519_vm4, %vm520_vm15  ;;  %v526_v5 = vor.u32 1.1754944e-38, %v525_v27  ;;  %v493_v36 = vand.u32 2147483647, %v402_v7 }
 0x315   :  { %v516_v22 = vsub.f32 1.0, %v515_v20  ;;  %v495_v37 = vand.u32 2147483648, %v402_v7  ;;  %vm489_vm9 = vweird.f32 %v402_v7  ;;  %v870_v44 = vunpack.i.l.bf16 %v1218_v9 }
 0x316   :  { %v502_v25 = vmul.f32 %v898_v1, %v501_v62  ;;  %739 = vst.msk [vmem:[#allocation9 + $0x10] sm:$0xff] %vm130_vm1, %v1221_v24  ;;  %vm494_vm11 = vcmp.eq.f32.partialorder %v493_v36, 8.507059e+37  ;;  %v871_v52 = vunpack.i.h.bf16 %v1218_v9 }
 0x317   :  { %v517_v28 = vmul.f32 %v900_v3, %v516_v22 }
 0x318   :  { %v503_v30 = vadd.f32 %v898_v1, %v502_v25 }
 0x319   :  { %v902_v12 = vpop.eup %901  ;;  %v518_v32 = vadd.f32 %v900_v3, %v517_v28 }
 0x31a   :  { %v507_v11 = vsel %vm506_vm3, %v898_v1, %v503_v30  ;;  %v485_v8 = vmul.f32 %v902_v12, %v402_v7  ;;  %vm490_vm8 = vweird.f32 %v902_v12 }
 0x31b   :  { %v530_v10 = vpop.permute.xlu2 %529  ;;  %v512_v15 = vsel %vm509_vm5, %v511_v13, %v507_v11  ;;  %v522_v16 = vsel %vm521_vm6, %v900_v3, %v518_v32  ;;  %vm491_vm10 = vmor %vm489_vm9, %vm490_vm8  ;;  %vm771_vm6 = vcmask 130048  }
 0x31c   :  { %550 = vmatpush.msra.mxu3 %v530_v10  ;;  %v527_v33 = vsel %vm524_vm7, %v526_v5, %v522_v16  ;;  %v486_v34 = vsub.f32 1.0, %v485_v8  ;;  %v513_v35 = vmul.f32 %v1179_v17, %v512_v15  ;;  %v496_v17 = vor.u32 1.1754944e-38, %v495_v37 }
 0x31d   :  { %v859_v38 = vpop.permute.xlu0 %858  ;;  %v528_v39 = vmul.f32 %v1181_v19, %v527_v33  ;;  %vm774_vm7 = vcmask 195584  }
 0x31e   :  { %v487_v40 = vmul.f32 %v902_v12, %v486_v34  ;;  %v860_v41 = vunpack.i.l.bf16 %v859_v38  ;;  %v861_v42 = vunpack.i.h.bf16 %v859_v38  ;;  %743 = vst.msk [vmem:[#allocation9 + $0x30] sm:$0xff] %vm130_vm1, %v513_v35 }
 0x31f   :  { %744 = vst.msk [vmem:[#allocation9 + $0x38] sm:$0xff] %vm130_vm1, %v528_v39 }
 0x320   :  { %v488_v43 = vadd.f32 %v902_v12, %v487_v40  ;;  %576 = vmatpush.msrb.mxu0 %v861_v42  ;;  %628 = vmatpush.msrb.mxu2 %v860_v41 }
 0x321   :  { %836 = vmatmul.msk.f32.vlgmr.msrb.gmra.mxu0 %vm130_vm1, %v1214_v63  ;;  %838 = vmatmul.msk.f32.vlgmr.msrb.gmra.mxu2 %vm130_vm1, %v1209_v47 }
 0x322   :  { %v492_v19 = vsel %vm491_vm10, %v902_v12, %v488_v43  ;;  %680 = vmatpush.msra.mxu0 %v870_v44 }
 0x323   :  { %v634_v45 = vpop.permute.xlu2 %633  ;;  %v497_v46 = vsel %vm494_vm11, %v496_v17, %v492_v19 }
 0x324   :  { %654 = vmatpush.msrb.mxu3 %v634_v45  ;;  %v498_v48 = vmul.f32 %v1187_v23, %v497_v46 }
 0x326   :  { %742 = vst.msk [vmem:[#allocation9 + $0x28] sm:$0xff] %vm130_vm1, %v498_v48 }
 0x329   :  { %840 = vmatmul.msk.f32.vlgmr.msra.gmra.mxu0 %vm130_vm1, %v498_v48 }
 0x32a   :  { %v864_v49 = vpop.permute.xlu1 %863 }
 0x32b   :  { %v866_v50 = vunpack.i.h.bf16 %v864_v49  ;;  %v865_v51 = vunpack.i.l.bf16 %v864_v49 }
 0x32d   :  { %602 = vmatpush.msrb.mxu1 %v865_v51  ;;  %732 = vmatpush.msra.mxu2 %v866_v50 }
 0x32e   :  { %837 = vmatmul.msk.f32.vlgmr.msrb.gmra.mxu1 %vm130_vm1, %v1221_v24  ;;  %842 = vmatmul.msk.f32.vlgmr.msra.gmra.mxu2 %vm130_vm1, %v528_v39 }
 0x32f   :  { %706 = vmatpush.msra.mxu1 %v871_v52 }
 0x336   :  { %841 = vmatmul.msk.f32.vlgmr.msra.gmra.mxu1 %vm130_vm1, %v513_v35 }
 0x348   :  { %v387_v23 = vpop.xlane.xlu0 %386 }
 0x349   :  { %903 = vrcp.f32 %v387_v23  ;;  %v420_v55 = vand.u32 2147483648, %v387_v23  ;;  %v418_v58 = vand.u32 2147483647, %v387_v23  ;;  %vm414_vm13 = vweird.f32 %v387_v23 }
 0x34b   :  { %v421_v60 = vor.u32 1.1754944e-38, %v420_v55  ;;  %vm419_vm15 = vcmp.eq.f32.partialorder %v418_v58, 8.507059e+37 }
 0x34f   :  { %v904_v47 = vpop.eup %903 }
 0x350   :  { %v410_v53 = vmul.f32 %v904_v47, %v387_v23  ;;  %vm415_vm12 = vweird.f32 %v904_v47 }
 0x351   :  { %vm416_vm14 = vmor %vm414_vm13, %vm415_vm12 }
 0x352   :  { %v411_v54 = vsub.f32 1.0, %v410_v53 }
 0x354   :  { %v412_v56 = vmul.f32 %v904_v47, %v411_v54 }
 0x355   :  { %v399_v57 = vpop.xlane.xlu1 %398 }
 0x356   :  { %v413_v59 = vadd.f32 %v904_v47, %v412_v56  ;;  %905 = vrcp.f32 %v399_v57  ;;  %v480_v4 = vand.u32 2147483648, %v399_v57  ;;  %v478_v7 = vand.u32 2147483647, %v399_v57 }
 0x357   :  { %vm474_vm3 = vweird.f32 %v399_v57 }
 0x358   :  { %v417_v61 = vsel %vm416_vm14, %v904_v47, %v413_v59  ;;  %v481_v18 = vor.u32 1.1754944e-38, %v480_v4  ;;  %vm479_vm5 = vcmp.eq.f32.partialorder %v478_v7, 8.507059e+37 }
 0x359   :  { %v422_v63 = vsel %vm419_vm15, %v421_v60, %v417_v61 }
 0x35a   :  { %v423_v0 = vmul.f32 %v1200_v31, %v422_v63 }
 0x35c   :  { %v906_v1 = vpop.eup %905  ;;  %835 = vmatmul.msk.f32.vlgmr.msra.gmra.mxu3 %vm130_vm1, %v423_v0  ;;  %737 = vst.msk [vmem:[#allocation9] sm:$0xff] %vm130_vm1, %v423_v0 }
 0x35d   :  { %v470_v2 = vmul.f32 %v906_v1, %v399_v57  ;;  %vm475_vm2 = vweird.f32 %v906_v1 }
 0x35e   :  { %vm476_vm4 = vmor %vm474_vm3, %vm475_vm2 }
 0x35f   :  { %v471_v3 = vsub.f32 1.0, %v470_v2 }
 0x361   :  { %v472_v6 = vmul.f32 %v906_v1, %v471_v3 }
 0x363   :  { %v473_v9 = vadd.f32 %v906_v1, %v472_v6 }
 0x365   :  { %v477_v20 = vsel %vm476_vm4, %v906_v1, %v473_v9 }
 0x366   :  { %v482_v62 = vsel %vm479_vm5, %v481_v18, %v477_v20 }
 0x367   :  { %v483_v31 = vmul.f32 %v1204_v14, %v482_v62 }
 0x369   :  { %839 = vmatmul.msk.f32.vlgmr.msrb.gmra.mxu3 %vm130_vm1, %v483_v31  ;;  %741 = vst.msk [vmem:[#allocation9 + $0x20] sm:$0xff] %vm130_vm1, %v483_v31 }
 0x36a   :  { %804 = dma.vmem_to_hbm [thread:$0]  %s797_s16, 1024, %s799_s19, [#allocation10], %s1036_s26, %s1036_s26, %s1037_s27  }
 0x39e   :  { %v578_v21 = vpop.f32.mrf.mxu0 }
 0x39f   :  { %747 = vrot.lane.b32.xlu2 %v578_v21, %s1037_s27 }
 0x3a4   :  { %v630_v22 = vpop.f32.mrf.mxu2 }
 0x3a5   :  { %763 = vrot.lane.b32.xlu1 %v630_v22, %s1046_s20 }
 0x3a6   :  { %v682_v24 = vpop.f32.mrf.mxu0 }
 0x3a7   :  { %749 = vrot.lane.b32.xlu2 %v682_v24, %s1037_s27 }
 0x3ab   :  { %v604_v14 = vpop.f32.mrf.mxu1 }
 0x3ac   :  { %755 = vrot.lane.b32.xlu0 %v604_v14, %s1047_s21 }
 0x3b1   :  { %v734_v26 = vpop.f32.mrf.mxu2 }
 0x3b3   :  { %v708_v25 = vpop.f32.mrf.mxu1 }
 0x3b4   :  { %757 = vrot.lane.b32.xlu2 %v708_v25, %s1047_s21 }
 0x3bc   :  { %765 = vrot.lane.b32.xlu2 %v734_v26, %s1046_s20 }
 0x3df   :  { %v552_v29 = vpop.f32.mrf.mxu3 }
 0x3ec   :  { %v656_v12 = vpop.f32.mrf.mxu3 }
 0x3f9   :  { %v748_v27 = vpop.permute.xlu2 %747 }
 0x3fa   :  { %v769_v8 = vsel %vm130_vm1, %v552_v29, %v748_v27 }
 0x401   :  { %v750_v28 = vpop.permute.xlu2 %749 }
 0x402   :  { %v770_v13 = vsel %vm130_vm1, %v656_v12, %v750_v28 }
 0x40e   :  { %v758_v30 = vpop.permute.xlu2 %757 }
 0x40f   :  { %v773_v32 = vsel %vm771_vm6, %v770_v13, %v758_v30 }
 0x416   :  { %v766_v11 = vpop.permute.xlu2 %765 }
 0x417   :  { %v776_v5 = vsel %vm774_vm7, %v773_v32, %v766_v11  ;;  %v764_v15 = vpop.permute.xlu1 %763 }
 0x418   :  { %778 = vst.msk [vmem:[#allocation8 + $0x8] sm:$0xff] %vm76_vm0, %v776_v5 }
 0x41e   :  { %v756_v10 = vpop.permute.xlu0 %755 }
 0x41f   :  { %v772_v16 = vsel %vm771_vm6, %v769_v8, %v756_v10 }
 0x420   :  { %v775_v33 = vsel %vm774_vm7, %v772_v16, %v764_v15 }
 0x421   :  { %777 = vst.msk [vmem:[#allocation8] sm:$0xff] %vm76_vm0, %v775_v33 }
 0x422   :  { %791 = dma.vmem_to_hbm [thread:$0]  %s784_s22, 256, %s786_s25, [#allocation4], %s1036_s26, %s1036_s26, %s1037_s27  }
 0x423   :  { %1031 = dma.done.wait [#allocation4], 256  }
 0x424   :  { %1032 = vsyncadd [#allocation4], 4294967040 }
 0x425   :  { %1033 = dma.done.wait [#allocation10], 1024  }
 0x426   :  { %1034 = vsyncadd [#allocation10], 4294966272 }
 0x427   :  { %813 = vsyncpa [#allocation3], 1 }
 0x428   :  { %814 = vsyncpa [#allocation6], 1 }
 0x429   :  { %815 = vsyncpa [#allocation4], 1 }
 0x42a   :  { %816 = vsyncpa [#allocation10], 1 }

</bundles_post_ra>
